<compile_context>
chip_gen: v5e
topology: v5e:2x2
jax: 0.10.0
libtpu: 0.0.40
codegen_flags: <defaults>
</compile_context>

<pallas_src>
import jax
import jax.numpy as jnp
from jax.experimental import pallas as pl
from jax.experimental.pallas import tpu as pltpu


NEG_SLOPE = 0.01  # nn.LeakyReLU default negative_slope

# Per-grid-step HBM traffic target (amortizes fixed per-step overhead on all gens) and
# a conservative VMEM budget that fits v7x's 64 MiB/TC (v5e/v6e have 128 MiB physical).
_TARGET_STEP_BYTES = 4 << 20
_VMEM_TILE_BUDGET = 40 << 20


def _round_up(x, m):
    return ((x + m - 1) // m) * m


def _largest_divisor_leq(n, k):
    k = max(1, min(n, k))
    while n % k:
        k -= 1
    return k


def mlp_kernel(x_ref, w1t_ref, w2t_ref, o_ref):
    # x_ref:   (bt, Cin, t_hw)   activation tile, channels on sublanes, spatial on lanes
    # w1t_ref: (Chid, Cin)       fc1 weight, pre-transposed, VMEM-resident
    # w2t_ref: (Cout, Chid)      fc2 weight, pre-transposed, VMEM-resident
    # o_ref:   (bt, Cout, t_hw)  lane-dense output tile
    w1t = w1t_ref[...]
    w2t = w2t_ref[...]
    bt = x_ref.shape[0]
    for b in range(bt):  # short, statically-unrolled batch loop
        x = x_ref[b]                                                    # (Cin, t_hw)
        h = jnp.dot(w1t, x, preferred_element_type=jnp.float32)         # (Chid, t_hw)
        h = jnp.maximum(h, NEG_SLOPE * h)                               # LeakyReLU (slope < 1)
        h = h.astype(x.dtype)
        y = jnp.dot(w2t, h, preferred_element_type=jnp.float32)         # (Cout, t_hw)
        o_ref[b] = y.astype(o_ref.dtype)


def _choose_tiling(B, Cin, Chid, Cout, HW, dtype_bytes):
    """Pick (bt, t_hw): batch-block count and lane-dense spatial tile."""
    t_hw_full = _round_up(HW, 128)

    # Batch-block when the whole feature map is too small to amortize step overhead.
    per_img_bytes = (Cin + Cout) * t_hw_full * dtype_bytes
    want_bt = max(1, _TARGET_STEP_BYTES // max(per_img_bytes, 1))
    bt = _largest_divisor_leq(B, want_bt)

    # Spatial tile: large enough for ~_TARGET_STEP_BYTES of HBM I/O per step, bounded
    # by the VMEM budget (double-buffered in/out tiles + f32 hidden intermediate).
    per_col_hbm = bt * (Cin + Cout) * dtype_bytes
    t_target = _round_up(-(-_TARGET_STEP_BYTES // per_col_hbm), 128)
    per_col_vmem = 2 * bt * (Cin + Cout) * dtype_bytes + Chid * 4
    t_vmem_max = max(128, (_VMEM_TILE_BUDGET // per_col_vmem) // 128 * 128)
    t_hw = min(t_hw_full, max(128, min(t_target, t_vmem_max)))

    # Megacore balance (v7x has 2 TCs): keep >= 2 grid points when possible.
    n_b, n_hw = B // bt, -(-HW // t_hw)
    if n_b * n_hw < 2:
        if bt > 1:
            bt = _largest_divisor_leq(B, bt // 2)
        elif HW > 128:
            t_hw = _round_up(-(-HW // 2), 128)
    return bt, t_hw


def mlp_pallas(x_nchw, w1, w2):
    """Fused Mlp forward.

    x_nchw: (B, Cin, H, W)
    w1:     (Cin, Chid)   == fc1 conv weight (Chid, Cin, 1, 1) transposed
    w2:     (Chid, Cout)  == fc2 conv weight (Cout, Chid, 1, 1) transposed
    returns (B, Cout, H, W)
    """
    B, Cin, H, W = x_nchw.shape
    Chid = w1.shape[1]
    Cout = w2.shape[1]
    HW = H * W
    dtype_bytes = jnp.dtype(x_nchw.dtype).itemsize

    # Free, contiguous reshape: NCHW -> (B, Cin, HW).  No transpose, no extra HBM pass.
    x3 = x_nchw.reshape(B, Cin, HW)
    # Pre-transpose weights once (tiny) so the kernel contracts over channels directly.
    w1t = jnp.transpose(w1)  # (Chid, Cin)
    w2t = jnp.transpose(w2)  # (Cout, Chid)

    bt, t_hw = _choose_tiling(B, Cin, Chid, Cout, HW, dtype_bytes)
    n_b = B // bt
    n_hw = pl.cdiv(HW, t_hw)

    # Explicit VMEM budget: v7x has 64 MiB physical (32 MiB scoped default); v5e/v6e
    # defaults (16/32 MiB) would otherwise block the large tiles chosen above.
    vmem_need = (2 * bt * (Cin + Cout) * t_hw * dtype_bytes      # double-buffered act tiles
                 + Chid * t_hw * 4                               # f32 hidden intermediate
                 + 2 * (Chid * Cin + Cout * Chid) * dtype_bytes)  # resident weights
    vmem_limit = int(min(64 << 20, max(32 << 20, vmem_need + (8 << 20))))

    cost = pl.CostEstimate(
        flops=2 * (Cin * Chid + Chid * Cout) * B * HW,
        transcendentals=0,
        bytes_accessed=(B * HW * (Cin + Cout) + Cin * Chid + Chid * Cout) * dtype_bytes,
    )

    out3 = pl.pallas_call(
        mlp_kernel,
        out_shape=jax.ShapeDtypeStruct((B, Cout, HW), x_nchw.dtype),
        grid_spec=pltpu.PrefetchScalarGridSpec(
            num_scalar_prefetch=0,
            grid=(n_b, n_hw),
            in_specs=[
                pl.BlockSpec((bt, Cin, t_hw), lambda b, j: (b, 0, j)),
                pl.BlockSpec((Chid, Cin), lambda b, j: (0, 0)),    # VMEM-resident weight
                pl.BlockSpec((Cout, Chid), lambda b, j: (0, 0)),   # VMEM-resident weight
            ],
            out_specs=pl.BlockSpec((bt, Cout, t_hw), lambda b, j: (b, 0, j)),
        ),
        compiler_params=pltpu.CompilerParams(
            # Both grid axes are independent -> shard across TensorCores (v7x megacore).
            dimension_semantics=("parallel", "parallel"),
            vmem_limit_bytes=vmem_limit,
        ),
        cost_estimate=cost,
    )(x3, w1t, w2t)

    return out3.reshape(B, Cout, H, W)


def mlp_reference(x_nchw, w1, w2):
    """Pure-JAX reference of the PyTorch forward (drop=0.0, bias=False)."""
    x = jnp.einsum("bchw,cd->bdhw", x_nchw, w1)
    x = jnp.maximum(x, NEG_SLOPE * x)
    x = jnp.einsum("bchw,cd->bdhw", x, w2)
    return x


if __name__ == "__main__":
    key = jax.random.PRNGKey(0)

    def make_case(k, B, dim, H, W, mlp_ratio=4):
        hidden = mlp_ratio * dim
        kx, kw1, kw2 = jax.random.split(k, 3)
        x = jax.random.normal(kx, (B, dim, H, W), dtype=jnp.float32)
        # Matmul-form weights == nn.Conv2d(dim, hidden, 1, bias=False) weight transposed.
        w1 = jax.random.normal(kw1, (dim, hidden), dtype=jnp.float32) / jnp.sqrt(float(dim))
        w2 = jax.random.normal(kw2, (hidden, dim), dtype=jnp.float32) / jnp.sqrt(float(hidden))
        return x, w1, w2

    k1, k2 = jax.random.split(key)

    # Case 1: module defaults (dim=4, mlp_ratio=4, bias=False, drop=0.0) on a 16x16 map.
    x, w1, w2 = make_case(k1, B=2, dim=4, H=16, W=16)
    y = jax.block_until_ready(mlp_pallas(x, w1, w2))
    y_ref = mlp_reference(x, w1, w2)
    assert y.shape == x.shape
    assert jnp.allclose(y, y_ref, atol=1e-5, rtol=1e-5), "mismatch vs reference (case 1)"

    # Case 2: HW % t_hw != 0 -> exercises the masked/ragged boundary spatial block.
    x, w1, w2 = make_case(k2, B=1, dim=4, H=20, W=20)
    y = jax.block_until_ready(mlp_pallas(x, w1, w2))
    y_ref = mlp_reference(x, w1, w2)
    assert jnp.allclose(y, y_ref, atol=1e-5, rtol=1e-5), "mismatch vs reference (case 2)"

    print("KERNEL_OK")
</pallas_src>

<mosaic_0001>
module attributes {stable_mosaic.version = 11 : i64} {
  func.func @mlp_kernel(%arg0: i32, %arg1: i32, %arg2: memref<1x4x256xf32, #tpu.memory_space<vmem>>, %arg3: memref<16x4xf32, #tpu.memory_space<vmem>>, %arg4: memref<4x16xf32, #tpu.memory_space<vmem>>, %arg5: memref<1x4x256xf32, #tpu.memory_space<vmem>>) attributes {dimension_semantics = [#tpu.dimension_semantics<parallel>, #tpu.dimension_semantics<parallel>], iteration_bounds = array<i64: 2, 1>, scalar_prefetch = 0 : i64, scratch_operands = 0 : i64, tpu.core_type = #tpu.core_type<tc>, window_params = [{transform_indices = @transform_0, window_bounds = array<i64: 1, 4, 256>}, {pipeline_mode = #tpu.pipeline_mode<synchronous>, transform_indices = @transform_1, window_bounds = array<i64: 16, 4>}, {pipeline_mode = #tpu.pipeline_mode<synchronous>, transform_indices = @transform_2, window_bounds = array<i64: 4, 16>}, {transform_indices = @transform_3, window_bounds = array<i64: 1, 4, 256>}]} {
    %c0 = arith.constant 0 : index
    %c0_0 = arith.constant 0 : index
    %0 = vector.load %arg3[%c0, %c0_0] : memref<16x4xf32, #tpu.memory_space<vmem>>, vector<16x4xf32>
    %c0_1 = arith.constant 0 : index
    %c0_2 = arith.constant 0 : index
    %1 = vector.load %arg4[%c0_1, %c0_2] : memref<4x16xf32, #tpu.memory_space<vmem>>, vector<4x16xf32>
    %c0_3 = arith.constant 0 : index
    %c0_4 = arith.constant 0 : index
    %c0_5 = arith.constant 0 : index
    %2 = vector.load %arg2[%c0_3, %c0_4, %c0_5] : memref<1x4x256xf32, #tpu.memory_space<vmem>>, vector<1x4x256xf32>
    %3 = vector.shape_cast %2 : vector<1x4x256xf32> to vector<4x256xf32>
    %cst = arith.constant dense<0.000000e+00> : vector<16x256xf32>
    %4 = tpu.matmul %0, %3, %cst {dimension_numbers = #tpu.dot_dimension_numbers<[1], [0], [0], [1], [0, 0, 1, 1], [], []>} : vector<16x4xf32>, vector<4x256xf32>, vector<16x256xf32> -> vector<16x256xf32>
    %cst_6 = arith.constant 0.00999999977 : f32
    %5 = vector.broadcast %cst_6 : f32 to vector<16x256xf32>
    %6 = arith.mulf %5, %4 : vector<16x256xf32>
    %7 = arith.maximumf %4, %6 : vector<16x256xf32>
    %cst_7 = arith.constant dense<0.000000e+00> : vector<4x256xf32>
    %8 = tpu.matmul %1, %7, %cst_7 {dimension_numbers = #tpu.dot_dimension_numbers<[1], [0], [0], [1], [0, 0, 1, 1], [], []>} : vector<4x16xf32>, vector<16x256xf32>, vector<4x256xf32> -> vector<4x256xf32>
    %c0_8 = arith.constant 0 : index
    %c0_9 = arith.constant 0 : index
    %c0_10 = arith.constant 0 : index
    %9 = vector.load %arg5[%c0_8, %c0_9, %c0_10] : memref<1x4x256xf32, #tpu.memory_space<vmem>>, vector<1x4x256xf32>
    %10 = vector.shape_cast %9 : vector<1x4x256xf32> to vector<4x256xf32>
    %11 = vector.shape_cast %8 : vector<4x256xf32> to vector<1x4x256xf32>
    tpu.vector_store %arg5[%c0_8, %c0_9, %c0_10], %11 {strides = array<i32>} : memref<1x4x256xf32, #tpu.memory_space<vmem>>, vector<1x4x256xf32>,
    return
  }
  func.func @transform_0(%arg0: i32, %arg1: i32) -> (i32, i32, i32) {
    %c0_i32 = arith.constant 0 : i32
    %c0_i32_0 = arith.constant 0 : i32
    return %arg0, %c0_i32, %arg1 : i32, i32, i32
  }
  func.func @transform_1(%arg0: i32, %arg1: i32) -> (i32, i32) {
    %c0_i32 = arith.constant 0 : i32
    %c0_i32_0 = arith.constant 0 : i32
    %c0_i32_1 = arith.constant 0 : i32
    return %c0_i32, %c0_i32_0 : i32, i32
  }
  func.func @transform_2(%arg0: i32, %arg1: i32) -> (i32, i32) {
    %c0_i32 = arith.constant 0 : i32
    %c0_i32_0 = arith.constant 0 : i32
    %c0_i32_1 = arith.constant 0 : i32
    return %c0_i32, %c0_i32_0 : i32, i32
  }
  func.func @transform_3(%arg0: i32, %arg1: i32) -> (i32, i32, i32) {
    %c0_i32 = arith.constant 0 : i32
    %c0_i32_0 = arith.constant 0 : i32
    return %arg0, %c0_i32, %arg1 : i32, i32, i32
  }
}

</mosaic_0001>

<bundles_post_ra>
// kernel: tpu_custom_call.1
= control target key start
LH: loop header
LB: loop body
LE: loop exit
PB: predicated region body
PF: predicated region fallthrough
CT: control target
= control target key end

     0   :  { %8 = vsyncpa [#allocation3], 0  ;;  %s706_s0 = inlined_call_operand.vmem [shape: f32[2,4,256], index: 0, kind: input, shape index: {}]   ;;  %s707_s1 = inlined_call_operand.vmem [shape: f32[16,4], index: 1, kind: input, shape index: {}]   ;;  %s708_s2 = inlined_call_operand.vmem [shape: f32[4,16], index: 2, kind: input, shape index: {}]   ;;  %s709_s3 = inlined_call_operand.hbm [shape: f32[2,4,256], index: 3, kind: output, shape index: {}]  }
   0x1   :  { %10 = vsyncpa [#allocation3 + $0x1], 0  ;;  %s597_s12 = smov 0   ;;  %s599_s13 = smov 0  }
   0x2   :  { %s601_s14 = smov 0   ;;  %s603_s15 = smov 0  }
   0x3   :  { %s605_s16 = smov 0   ;;  %s607_s17 = smov 0  }
   0x4 LB: > { %s419_s18 = sadd.s32 4294967295, %s575_s17   ;;  %s420_s19 = sadd.s32 4294967294, %s575_s17   ;;  %s575_s17 = sphi %s607_s17, %s16_s17   ;;  %s571_s16 = sphi %s605_s16, %s716_s16   ;;  %s567_s15 = sphi %s603_s15, %s715_s15   ;;  %s563_s14 = sphi %s601_s14, %s714_s14   ;;  %s559_s13 = sphi %s599_s13, %s713_s13   ;;  %s555_s12 = sphi %s597_s12, %s712_s12  }
   0x5   : > { %s28_s20 = sadd.s32 1, %s571_s16  ;;  %s107_s21 = sadd.s32 1, %s563_s14 }
   0x6   : > { %p30_p0 = scmp.ge.s32.totalorder %s28_s20, 2  ;;  %p117_p1 = scmp.ne.s32.totalorder %s563_s14, %s559_s13 }
   0x7   : > { %p118_p2 = scmp.eq.s32.totalorder %s419_s18, 1  ;;  %p123_p3 = scmp.ne.s32.totalorder %s559_s13, %s555_s12 }
   0x8   : > { %s718_s20 = smov (%p30_p0, %s28_s20), 0  ;;  %p124_p5 = scmp.eq.s32.totalorder %s420_s19, 1 }
   0x9   : > { %p637_p4 = por %p118_p2, %p117_p1  ;;  %s102_s23 = ssub.s32 %s571_s16, %s718_s20 }
   0xa   : > { %p423_p6 = scmp.ge.s32.totalorder %s575_s17, 1  ;;  %p105_p7 = scmp.eq.s32.totalorder %s102_s23, 0 }
   0xb   : > { %p644_p8 = por %p124_p5, %p123_p3  ;;  %p161_p9 = scmp.lt.s32.totalorder %s575_s17, 3 }
   0xc   : > { %s650_s25 = scalar_select %p105_p7, %s563_s14, %s107_s21  }
   0xd   : > { %p162_p10 = pnand %p423_p6, %p161_p9 }
   0xe   : > { %p190_p11 = scmp.lt.s32.totalorder (!%p162_p10), %s567_s15, 1  ;;  %s186_s10 = sand.u32 (!%p162_p10), 1, %s559_s13  }
   0xf   : > { %165 = sbr.rel (%p162_p10) target bundleno = 313 (0x139), region = 32  ;;  %s424_s11 = sshll.u32 (!%p162_p10), %s186_s10, 3 }
  0x10   : > { %s441_s18 = sshll.u32 (!%p162_p10), %s567_s15, 3  ;;  %s325_s29 = scalar_lea.sflag (!%p162_p10), [#allocation3], %s186_s10 }
  0x11   : > { %s338_s23 = scalar_lea.hbm (!%p162_p10), %s709_s3, %s441_s18  ;;  %s517_s6 = scalar_lea.hbm (!%p162_p10), %s709_s3, 16 }
  0x12   : > { %s342_s28 = sshll.u32 (!%p162_p10), %s338_s23, 4  ;;  %s343_s28 = int_to_ptr.hbm [resolvable:$true] %s342_s28 }
  0x14   : > { %s191_s26 = scalar_select %p190_p11, %s567_s15, 1  ;;  %vm215_vm0 = vcmask 1043456   ;;  %v200_v1 = vld [vmem:[%s707_s1] sm:$0xff]  ;;  %vm208_vm1 = vcmask 31744   ;;  %v201_v4 = vld [vmem:[%s707_s1 + $0x8] sm:$0xff]  ;;  %vm274_vm2 = vcmask 130048  }
  0x15   : > { %v202_v17 = vld [vmem:[%s708_s2] sm:$0xf] }
  0x16   : > { %s440_s27 = sshll.u32 %s191_s26, 3  ;;  %s188_s26 = scalar_lea.vmem [#allocation2], %s424_s11 }
  0x17   : > { %s197_s30 = scalar_lea.vmem %s706_s0, %s440_s27  ;;  %s340_s27 = sshll.u32 %s188_s26, 4  ;;  %s341_s27 = int_to_ptr.vmem [resolvable:$true] %s340_s27 }
  0x18   : > { %v203_v0 = vld [vmem:[%s197_s30] sm:$0xff]  ;;  %s511_s30 = sshra.s32 %s343_s28, 4  ;;  %s512_s30 = int_to_ptr.hbm [resolvable:$true] %s511_s30 }
  0x19   : > { %205 = vst [vmem:[#allocation1] ss:$2 sm:$0xff] %v203_v0  ;;  %s513_s15 = scalar_lea.hbm %s512_s30, 8  ;;  %p518_p1 = scmp.lt.s32.totalorder %s512_s30, %s709_s3 }
  0x1a   : > { %p514_p12 = scmp.ne.s32.totalorder %s512_s30, %s513_s15  ;;  %p519_p2 = scmp.lt.s32.totalorder %s517_s6, %s513_s15 }
  0x1c   : > { %p515_p13 = pnand %p514_p12, %p637_p4  ;;  %p520_p3 = por %p519_p2, %p518_p1 }
  0x1e   : > { %p516_p0 = pneg %p515_p13 }
  0x20   : > { %v206_v2 = vld.sshfl [vmem:[#allocation1] sm:$0xff pattern:$0x75316420]  ;;  %v207_v3 = vld.sshfl [vmem:[#allocation1 + $0x8] sm:$0xff pattern:$0x75316420]  ;;  %p521_p5 = pnand %p520_p3, %p516_p0 }
  0x21   : > { %427 = vmatpush.msk.msra.mxu0 %vm215_vm0, %v206_v2  ;;  %430 = vmatpush.msk.msra.mxu1 %vm215_vm0, %v207_v3 }
  0x22   : > { %428 = vmatmul.msk.f32.vlgmr.msra.gmra.mxu0 %vm208_vm1, %v200_v1  ;;  %431 = vmatmul.msk.f32.vlgmr.msra.gmra.mxu1 %vm208_vm1, %v200_v1 }
  0x2a   : > { %429 = vmatmul.msk.f32.gmra.mxu0 %vm208_vm1, %v201_v4  ;;  %432 = vmatmul.msk.f32.gmra.mxu1 %vm208_vm1, %v201_v4 }
  0x9f   : > { %v237_v5 = vpop.f32.mrf.mxu0  ;;  %v260_v6 = vpop.f32.mrf.mxu1 }
  0xa0   : > { %v266_v7 = vmul.f32 0.01, %v237_v5  ;;  %v267_v10 = vmul.f32 0.01, %v260_v6 }
  0xa2   : > { %v270_v15 = vmax.f32 %v237_v5, %v266_v7  ;;  %v271_v16 = vmax.f32 %v260_v6, %v267_v10 }
  0xa7   : > { %v240_v8 = vpop.f32.mrf.mxu0  ;;  %v263_v9 = vpop.f32.mrf.mxu1 }
  0xa8   : > { %v268_v11 = vmul.f32 0.01, %v240_v8  ;;  %v269_v12 = vmul.f32 0.01, %v263_v9 }
  0xaa   : > { %v272_v13 = vmax.f32 %v240_v8, %v268_v11  ;;  %v273_v14 = vmax.f32 %v263_v9, %v269_v12 }
  0xac   : > { %292 = vmatpush.msra.mxu2 %v272_v13  ;;  %312 = vmatpush.msra.mxu3 %v273_v14 }
  0xae   : > { %293 = vmatpush.msra.mxu2 %v270_v15  ;;  %313 = vmatpush.msra.mxu3 %v271_v16 }
  0xaf   : > { %434 = vmatmul.msk.f32.vlgmr.msra.gmra.mxu3 %vm274_vm2, %v202_v17  ;;  %433 = vmatmul.msk.f32.vlgmr.msra.gmra.mxu2 %vm274_vm2, %v202_v17 }
 0x132   : > { %v315_v18 = vpop.f32.mrf.mxu3  ;;  %v295_v19 = vpop.f32.mrf.mxu2 }
 0x133   : > { %v320_v20 = vrot.slane %v315_v18, 4 }
 0x135   : > { %v321_v21 = vsel %vm215_vm0, %v295_v19, %v320_v20 }
 0x136   : > { %323 = vst [vmem:[%s188_s26] sm:$0xff] %v321_v21 }
 0x137   : > { %524 = shalt.err (!%p521_p5)
}
 0x138   : > { %442 = dma.vmem_to_hbm [thread:$0]  (%p637_p4), %s341_s27, 128, %s343_s28, %s325_s29  }
 0x139 PF: > { %p448_p6 = scmp.ge.s32.totalorder %s575_s17, 2  ;;  %s354_s9 = sand.u32 1, %s555_s12  }
 0x13a   : > { %s355_s10 = scalar_lea.sflag [#allocation3], %s354_s9 }
 0x13b   : > { %p445_p7 = pnand %p448_p6, %p644_p8 }
 0x13d   : > { %p446_p9 = pneg %p445_p7 }
 0x13f   : > { %550 = dma.done.wait (%p446_p9), %s355_s10, 128  }
 0x140   : > { %552 = vsyncadd (%p446_p9), %s355_s10, 4294967168  ;;  %s16_s17 = sadd.s32 1, %s575_s17   ;;  %s712_s12 = smov %s559_s13 }
 0x141   : > { %p13_p10 = scmp.ge.s32.totalorder %s16_s17, 4   ;;  %s713_s13 = smov %s563_s14 }
 0x142   : > { %s714_s14 = smov %s650_s25  ;;  %s715_s15 = smov %s571_s16 }
 0x143   : > { %s716_s16 = smov %s718_s20  ;;  %15 = sbr.rel (!%p13_p10) target bundleno = 4 (0x4), region = 67 }
 0x148   :  { %361 = vsyncpa [#allocation3], 1 }
 0x149   :  { %363 = vsyncpa [#allocation3 + $0x1], 1 }

</bundles_post_ra>
